<compile_context>
chip_gen: v5e
topology: v5e:2x2
jax: 0.10.0
libtpu: 0.0.40
codegen_flags: <defaults>
</compile_context>

<pallas_src>
import jax
import jax.numpy as jnp
from jax.experimental import pallas as pl
from jax.experimental.pallas import tpu as pltpu

ACTIONS = ["move"]
DIMS = [1]

_N_HEADS = 4      # Qs, actions, policy, entropy
_SUBLANE = 8      # f32 sublane tile
_LANE = 128       # lane tile


def _lawmaker_zero_kernel(flat_ref, ents_ref, zeros_ref):
    # flat_ref / ents_ref are raw HBM refs (memory_space=pl.ANY); they are
    # never read, exactly matching the PyTorch forward which ignores its
    # inputs -> zero input DMA traffic.
    del flat_ref, ents_ref
    # One lane-dense, unmasked zero-fill of the fused output slab (VPU only).
    zeros_ref[...] = jnp.zeros_like(zeros_ref)


def lawmaker_forward(flat, ents, batch_size):
    """Pallas equivalent of LawmakerAbstract.forward.

    Returns {'Qs': {'move': [B,1]}, 'actions': {...}, 'policy': {...},
             'entropy': {...}} with float32 zeros, matching torch.zeros.
    """
    dim = DIMS[0]
    # Pad the fused output to an (8, 128)-aligned slab so the store is a full
    # unmasked vreg write and the writeback is a single lane-dense DMA.
    b_pad = max(_SUBLANE, pl.cdiv(batch_size, _SUBLANE) * _SUBLANE)
    lanes = max(_LANE, pl.cdiv(_N_HEADS * dim, _LANE) * _LANE)

    slab = pl.pallas_call(
        _lawmaker_zero_kernel,
        out_shape=jax.ShapeDtypeStruct((b_pad, lanes), jnp.float32),
        in_specs=[
            pl.BlockSpec(memory_space=pl.ANY),   # flat: left in HBM, no DMA
            pl.BlockSpec(memory_space=pl.ANY),   # ents: left in HBM, no DMA
        ],
        out_specs=pl.BlockSpec(memory_space=pltpu.MemorySpace.VMEM),
    )(flat, ents)

    def _head(i):
        # Slice the i-th [B, dim] zero view out of the fused lane-dense slab.
        return slab[:batch_size, i * dim:(i + 1) * dim]

    return {
        "Qs":      {ACTIONS[0]: _head(0)},
        "actions": {ACTIONS[0]: _head(1)},
        "policy":  {ACTIONS[0]: _head(2)},
        "entropy": {ACTIONS[0]: _head(3)},
    }


if __name__ == "__main__":
    key = jax.random.PRNGKey(0)
    k_flat, k_ents = jax.random.split(key)

    batch_size = 2
    flat_dim = 32   # flattened observation features
    n_ents = 8      # entities per observation

    # Deterministic synthetic inputs (unused by the forward, as in PyTorch).
    flat = jax.random.normal(k_flat, (batch_size, flat_dim), dtype=jnp.float32)
    ents = jax.random.normal(k_ents, (batch_size, n_ents, flat_dim), dtype=jnp.float32)

    out = lawmaker_forward(flat, ents, batch_size)
    out = jax.block_until_ready(out)

    # Sanity checks against the reference semantics.
    for k in ("Qs", "actions", "policy", "entropy"):
        v = out[k]["move"]
        assert v.shape == (batch_size, 1), v.shape
        assert v.dtype == jnp.float32, v.dtype
        assert bool(jnp.all(v == 0.0))

    print("KERNEL_OK")
</pallas_src>

<mosaic_0001>
module attributes {stable_mosaic.version = 11 : i64} {
  func.func @_lawmaker_zero_kernel(%arg0: memref<2x32xf32, #tpu.memory_space<any>>, %arg1: memref<2x8x32xf32, #tpu.memory_space<any>>, %arg2: memref<8x128xf32, #tpu.memory_space<vmem>>) attributes {dimension_semantics = [], scalar_prefetch = 0 : i64, scratch_operands = 0 : i64, tpu.core_type = #tpu.core_type<tc>} {
    %cst = arith.constant 0.000000e+00 : f32
    %0 = vector.broadcast %cst : f32 to vector<8x128xf32>
    %c0 = arith.constant 0 : index
    %c0_0 = arith.constant 0 : index
    %1 = vector.load %arg2[%c0, %c0_0] : memref<8x128xf32, #tpu.memory_space<vmem>>, vector<8x128xf32>
    tpu.vector_store %arg2[%c0, %c0_0], %0 {strides = array<i32>} : memref<8x128xf32, #tpu.memory_space<vmem>>, vector<8x128xf32>,
    return
  }
}

</mosaic_0001>

<bundles_post_ra>
// kernel: tpu_custom_call.1
= control target key start
LH: loop header
LB: loop body
LE: loop exit
PB: predicated region body
PF: predicated region fallthrough
CT: control target
= control target key end

     0   :  { %7 = vsyncpa [#allocation3], 0  ;;  %v53_v0 = vmov 0.0   ;;  %s54_s12 = smov [#allocation2]   ;;  %s73_s0 = inlined_call_operand.hbm [shape: f32[2,32], index: 0, kind: input, shape index: {}]   ;;  %s74_s1 = inlined_call_operand.hbm [shape: f32[2,8,32], index: 1, kind: input, shape index: {}]   ;;  %s75_s2 = inlined_call_operand.hbm [shape: f32[8,128], index: 2, kind: output, shape index: {}]  }
   0x1   :  { %s16_s11 = sshll.u32 %s75_s2, 4  ;;  %8 = vst [vmem:[#allocation2] sm:$0xff] %v53_v0  ;;  %s14_s13 = sshll.u32 %s54_s12, 4  ;;  %s17_s11 = int_to_ptr.hbm [resolvable:$true] %s16_s11  ;;  %s15_s13 = int_to_ptr.vmem [resolvable:$true] %s14_s13 }
   0x2   :  { %19 = dma.vmem_to_hbm [thread:$0]  %s15_s13, 128, %s17_s11, [#allocation3]  }
   0x3   :  { %51 = dma.done.wait [#allocation3], 128  }
   0x4   :  { %52 = vsyncadd [#allocation3], 4294967168 }
   0x5   :  { %24 = vsyncpa [#allocation3], 1 }

</bundles_post_ra>
